<compile_context>
chip_gen: v6e
topology: v6e:2x2x1
jax: 0.10.0
libtpu: 0.0.40
codegen_flags: <defaults>
</compile_context>

<pallas_src>
import functools
import math

import jax
import jax.numpy as jnp
from jax.experimental import pallas as pl
from jax.experimental.pallas import tpu as pltpu

_LANE = 128


def _sublane_multiple(dtype) -> int:
    itemsize = jnp.dtype(dtype).itemsize
    return {4: 8, 2: 16, 1: 32}.get(itemsize, 8)


def _block_budget_and_vmem_limit():
    """Chip-aware input-block byte budget and scoped-VMEM limit."""
    default_budget = 8 << 20   # 8 MiB block (16 MiB double-buffered)
    default_limit = 32 << 20   # raise v5e's 16 MiB scoped default; safe everywhere
    try:
        vmem = int(pltpu.get_tpu_info().vmem_capacity_bytes)
    except Exception:
        return default_budget, default_limit
    # ~1/5 of physical VMEM per block (capped at 12 MiB): double-buffered input
    # (~2/5) plus the f32 accumulator, output buffers and internal scratch stay
    # well clear of physical capacity on v5e/v6e (128 MiB) and v7x (64 MiB).
    budget = max(4 << 20, min(12 << 20, vmem // 5))
    limit = min(vmem // 2, 2 * budget + (8 << 20))
    return budget, limit


def _pick_batch_tile(B: int, bytes_per_batch_row: int, block_budget: int) -> int:
    """Divisor of B (multiple of 8 when possible), targeting the block budget
    while preferring >= 2 batch blocks so v7x's two TensorCores both get work."""
    divs8 = [d for d in range(8, B + 1, 8) if B % d == 0]
    if not divs8:
        return B  # full extent; legal as a per-dim full-extent block
    cands = [d for d in divs8 if B // d >= 2] or divs8
    fitting = [d for d in cands if d * bytes_per_batch_row <= block_budget]
    return max(fitting) if fitting else min(cands)


def _gap_kernel(x_ref, o_ref, acc_ref, *, inv_s: float):
    """Sum tokens into an f32 VMEM accumulator; scale + cast on the last step."""
    s = pl.program_id(2)  # token-reduction axis, innermost

    @pl.when(s == 0)
    def _():
        acc_ref[...] = jnp.zeros_like(acc_ref)

    # x block is (tB, seq_tile, cT); reduce the token axis in f32.
    acc_ref[...] += jnp.sum(x_ref[...].astype(jnp.float32), axis=1)

    @pl.when(s == pl.num_programs(2) - 1)
    def _():
        o_ref[...] = (acc_ref[...] * inv_s).astype(o_ref.dtype)


def global_average_pooling(x: jax.Array) -> jax.Array:
    """Mean over axis 1 of a (B, S, C) array, computed with a Pallas TPU kernel."""
    B, S, C = x.shape
    orig_dtype = x.dtype
    itemsize = jnp.dtype(x.dtype).itemsize

    # --- Lane-dense layout: fold g consecutive tokens into the channel axis so
    # the last (lane) dim is a multiple of 128.  Any token-axis padding is done
    # with zeros, which do not change the sum (we divide by the true S below).
    g = 1 if C % _LANE == 0 else math.lcm(C, _LANE) // C
    Cp = g * C
    S_f = -(-S // g)  # ceil(S / g): folded token extent before tile padding

    block_budget, vmem_limit = _block_budget_and_vmem_limit()

    # --- Batch tile (parallel axis); optional channel split so the grid keeps a
    # >= 2-extent parallel axis when there is only one batch block (v7x megacore).
    tB = _pick_batch_tile(B, S_f * Cp * itemsize, block_budget)
    n_batch_blocks = B // tB
    if n_batch_blocks == 1 and Cp % (2 * _LANE) == 0:
        cT = Cp // 2
    else:
        cT = Cp
    n_chan_blocks = Cp // cT

    # --- Token tile: as big as the budget allows, sublane aligned; pad the
    # folded token axis so the tile always divides evenly (never a VMEM blowup).
    sub = _sublane_multiple(x.dtype)
    row_bytes = tB * cT * itemsize
    budget_rows = max(1, block_budget // row_bytes)
    if budget_rows >= S_f:
        seq_tile = S_f  # single full-extent token block (legal regardless of sub)
    else:
        seq_tile = max(sub, (budget_rows // sub) * sub)
    S_fp = -(-S_f // seq_tile) * seq_tile
    n_seq_blocks = S_fp // seq_tile

    pad = S_fp * g - S
    if pad > 0:
        x = jnp.pad(x, ((0, 0), (0, pad), (0, 0)))
    x_folded = x.reshape(B, S_fp, Cp)

    # Write the final mean directly in the input dtype when the store layout is
    # clean (no token fold, sublane-aligned or full-extent batch tile);
    # otherwise keep f32 and cast outside.
    if g == 1 and (tB % _sublane_multiple(orig_dtype) == 0 or tB == B):
        out_dtype = orig_dtype
    else:
        out_dtype = jnp.float32
    out_itemsize = jnp.dtype(out_dtype).itemsize

    grid = (n_batch_blocks, n_chan_blocks, n_seq_blocks)

    cost = pl.CostEstimate(
        flops=B * S_fp * Cp,
        transcendentals=0,
        bytes_accessed=B * S_fp * Cp * itemsize + B * Cp * out_itemsize,
    )

    kernel = functools.partial(_gap_kernel, inv_s=float(1.0 / S))

    out = pl.pallas_call(
        kernel,
        out_shape=jax.ShapeDtypeStruct((B, Cp), out_dtype),
        grid_spec=pltpu.PrefetchScalarGridSpec(
            num_scalar_prefetch=0,
            grid=grid,
            in_specs=[
                pl.BlockSpec((tB, seq_tile, cT), lambda b, c, s: (b, s, c)),
            ],
            # Same (tB, cT) output tile for every step of the reduction axis;
            # it is only written on the last step from the f32 scratch.
            out_specs=pl.BlockSpec((tB, cT), lambda b, c, s: (b, c)),
            scratch_shapes=[pltpu.VMEM((tB, cT), jnp.float32)],
        ),
        compiler_params=pltpu.CompilerParams(
            dimension_semantics=("parallel", "parallel", "arbitrary"),
            vmem_limit_bytes=vmem_limit,
        ),
        cost_estimate=cost,
    )(x_folded)

    if g == 1:
        return out if out.dtype == orig_dtype else out.astype(orig_dtype)
    # Undo the token fold: the kernel already applied 1/S, so summing the g
    # folded partial means yields the true mean over S.
    return out.reshape(B, g, C).sum(axis=1).astype(orig_dtype)


if __name__ == "__main__":
    key = jax.random.PRNGKey(0)

    # Case 1: f32, C=32 (< 128) -> lane-dense token fold (g=4), S % g == 0.
    B, S, C = 2, 64, 32
    x = jax.random.normal(key, (B, S, C), dtype=jnp.float32)
    out = jax.block_until_ready(global_average_pooling(x))
    ref = jnp.mean(x, axis=1)
    assert out.shape == (B, C), f"bad shape {out.shape}"
    assert jnp.allclose(out, ref, atol=1e-5, rtol=1e-5), "f32 mismatch vs jnp.mean"

    # Case 2: bf16, C=128 -> lane-dense already (g=1), in-kernel scale + bf16 store.
    B2, S2, C2 = 4, 48, 128
    x2 = jax.random.normal(jax.random.PRNGKey(1), (B2, S2, C2), dtype=jnp.bfloat16)
    out2 = jax.block_until_ready(global_average_pooling(x2))
    ref2 = jnp.mean(x2.astype(jnp.float32), axis=1)
    assert out2.shape == (B2, C2), f"bad shape {out2.shape}"
    assert jnp.allclose(out2.astype(jnp.float32), ref2, atol=2e-2, rtol=2e-2), (
        "bf16 mismatch vs f32 reference"
    )

    # Case 3: f32, awkward S (S % g != 0) -> zero-pad token axis, stays lane-dense.
    B3, S3, C3 = 2, 50, 32
    x3 = jax.random.normal(jax.random.PRNGKey(2), (B3, S3, C3), dtype=jnp.float32)
    out3 = jax.block_until_ready(global_average_pooling(x3))
    ref3 = jnp.mean(x3, axis=1)
    assert out3.shape == (B3, C3), f"bad shape {out3.shape}"
    assert jnp.allclose(out3, ref3, atol=1e-5, rtol=1e-5), "padded-S mismatch"

    # Case 4: f32, B=16 -> tB=8, two batch-parallel blocks, orig-dtype store.
    B4, S4, C4 = 16, 64, 128
    x4 = jax.random.normal(jax.random.PRNGKey(3), (B4, S4, C4), dtype=jnp.float32)
    out4 = jax.block_until_ready(global_average_pooling(x4))
    ref4 = jnp.mean(x4, axis=1)
    assert out4.shape == (B4, C4), f"bad shape {out4.shape}"
    assert jnp.allclose(out4, ref4, atol=1e-5, rtol=1e-5), "batched-tile mismatch"

    print("KERNEL_OK")
</pallas_src>

<mosaic_0001>
module attributes {stable_mosaic.version = 11 : i64} {
  func.func @_gap_kernel(%arg0: i32, %arg1: i32, %arg2: i32, %arg3: memref<2x16x128xf32, #tpu.memory_space<vmem>>, %arg4: memref<2x128xf32, #tpu.memory_space<vmem>>, %arg5: memref<2x128xf32, #tpu.memory_space<vmem>>) attributes {dimension_semantics = [#tpu.dimension_semantics<parallel>, #tpu.dimension_semantics<parallel>, #tpu.dimension_semantics<arbitrary>], iteration_bounds = array<i64: 1, 1, 1>, scalar_prefetch = 0 : i64, scratch_operands = 1 : i64, tpu.core_type = #tpu.core_type<tc>, window_params = [{transform_indices = @transform_0, window_bounds = array<i64: 2, 16, 128>}, {transform_indices = @transform_1, window_bounds = array<i64: 2, 128>}]} {
    %c0_i32 = arith.constant 0 : i32
    %0 = arith.cmpi eq, %arg2, %c0_i32 : i32
    %1 = arith.extui %0 : i1 to i32
    %c0_i32_0 = arith.constant 0 : i32
    %2 = arith.cmpi ne, %1, %c0_i32_0 : i32
    scf.if %2 {
      %cst_9 = arith.constant 0.000000e+00 : f32
      %11 = vector.broadcast %cst_9 : f32 to vector<2x128xf32>
      %c0_10 = arith.constant 0 : index
      %c0_11 = arith.constant 0 : index
      %12 = vector.load %arg5[%c0_10, %c0_11] : memref<2x128xf32, #tpu.memory_space<vmem>>, vector<2x128xf32>
      tpu.vector_store %arg5[%c0_10, %c0_11], %11 {strides = array<i32>} : memref<2x128xf32, #tpu.memory_space<vmem>>, vector<2x128xf32>,
    } else {
    }
    %c0 = arith.constant 0 : index
    %c0_1 = arith.constant 0 : index
    %3 = vector.load %arg5[%c0, %c0_1] : memref<2x128xf32, #tpu.memory_space<vmem>>, vector<2x128xf32>
    %c0_2 = arith.constant 0 : index
    %c0_3 = arith.constant 0 : index
    %c0_4 = arith.constant 0 : index
    %4 = vector.load %arg3[%c0_2, %c0_3, %c0_4] : memref<2x16x128xf32, #tpu.memory_space<vmem>>, vector<2x16x128xf32>
    %cst = arith.constant dense<0.000000e+00> : vector<2x128xf32>
    %5 = vector.multi_reduction <add>, %4, %cst [1] : vector<2x16x128xf32> to vector<2x128xf32>
    %6 = arith.addf %3, %5 : vector<2x128xf32>
    %c0_5 = arith.constant 0 : index
    %c0_6 = arith.constant 0 : index
    %7 = vector.load %arg5[%c0_5, %c0_6] : memref<2x128xf32, #tpu.memory_space<vmem>>, vector<2x128xf32>
    tpu.vector_store %arg5[%c0_5, %c0_6], %6 {strides = array<i32>} : memref<2x128xf32, #tpu.memory_space<vmem>>, vector<2x128xf32>,
    %c0_i32_7 = arith.constant 0 : i32
    %8 = arith.cmpi eq, %arg2, %c0_i32_7 : i32
    %9 = arith.extui %8 : i1 to i32
    %c0_i32_8 = arith.constant 0 : i32
    %10 = arith.cmpi ne, %9, %c0_i32_8 : i32
    scf.if %10 {
      %c0_9 = arith.constant 0 : index
      %c0_10 = arith.constant 0 : index
      %11 = vector.load %arg5[%c0_9, %c0_10] : memref<2x128xf32, #tpu.memory_space<vmem>>, vector<2x128xf32>
      %cst_11 = arith.constant 1.562500e-02 : f32
      %12 = vector.broadcast %cst_11 : f32 to vector<2x128xf32>
      %13 = arith.mulf %11, %12 : vector<2x128xf32>
      %c0_12 = arith.constant 0 : index
      %c0_13 = arith.constant 0 : index
      %14 = vector.load %arg4[%c0_12, %c0_13] : memref<2x128xf32, #tpu.memory_space<vmem>>, vector<2x128xf32>
      tpu.vector_store %arg4[%c0_12, %c0_13], %13 {strides = array<i32>} : memref<2x128xf32, #tpu.memory_space<vmem>>, vector<2x128xf32>,
    } else {
    }
    return
  }
  func.func @transform_0(%arg0: i32, %arg1: i32, %arg2: i32) -> (i32, i32, i32) {
    %c0_i32 = arith.constant 0 : i32
    return %arg0, %arg2, %arg1 : i32, i32, i32
  }
  func.func @transform_1(%arg0: i32, %arg1: i32, %arg2: i32) -> (i32, i32) {
    %c0_i32 = arith.constant 0 : i32
    return %arg0, %arg1 : i32, i32
  }
}

</mosaic_0001>

<bundles_post_ra>
// kernel: tpu_custom_call.1
= control target key start
LH: loop header
LB: loop body
LE: loop exit
PB: predicated region body
PF: predicated region fallthrough
CT: control target
= control target key end

     0   :  { %6 = vsyncpa [#allocation4], 0  ;;  %s145_s0 = inlined_call_operand.hbm [shape: f32[2,16,128], index: 0, kind: input, shape index: {}]   ;;  %s146_s1 = inlined_call_operand.hbm [shape: f32[2,128], index: 1, kind: output, shape index: {}]  }
   0x1   :  { %7 = vsyncpa [#allocation5], 0  ;;  %s124_s6 = smov [#allocation3]  }
   0x2   :  { %s13_s7 = sshll.u32 %s124_s6, 4  ;;  %s14_s7 = int_to_ptr.vmem [resolvable:$true] %s13_s7 }
   0x3   :  { %s88_s8 = scalar_lea.vmem %s14_s7, 512  ;;  %p93_p1 = scmp.lt.s32.totalorder %s14_s7, %s14_s7 }
   0x4   :  { %p89_p0 = scmp.ne.s32.totalorder %s14_s7, %s88_s8  ;;  %p94_p2 = scmp.lt.s32.totalorder %s88_s8, %s88_s8 }
   0x6   :  { %p95_p3 = por %p94_p2, %p93_p1 }
   0x8   :  { %p96_p4 = pnand %p95_p3, %p89_p0 }
   0xa   :  { %99 = shalt.err (!%p96_p4)
}
   0xb   :  { %s125_s9 = smov 128   ;;  %s126_s10 = smov 8  }
   0xc   :  { %19 = dma.hbm_to_vmem [thread:$0]  %s145_s0, 512, %s14_s7, [#allocation4], %s125_s9, %s125_s9, %s126_s10  }
   0xd   :  { %120 = dma.done.wait [#allocation4], 512  }
   0xe   :  { %121 = vsyncadd [#allocation4], 4294966784  ;;  %v127_v0 = vmov 0.0   ;;  %v29_v1 = vld [vmem:[#allocation3] sm:$0xff]  ;;  %v30_v2 = vld [vmem:[#allocation3 + $0x8] sm:$0xff]  ;;  %vm49_vm0 = vcmask 1041409  }
   0xf   :  { %27 = vst [vmem:[#allocation2] sm:$0x3] %v127_v0  ;;  %v31_v3 = vld [vmem:[#allocation3 + $0x10] sm:$0xff]  ;;  %v32_v4 = vld [vmem:[#allocation3 + $0x18] sm:$0xff]  ;;  %v33_v5 = vadd.f32 %v30_v2, %v29_v1  ;;  %s128_s0 = smov [#allocation6]  }
  0x10   :  { %v40_v6 = vadd.f32 %v32_v4, %v31_v3  ;;  %s66_s13 = sshll.u32 %s128_s0, 4  ;;  %s67_s13 = int_to_ptr.vmem [resolvable:$true] %s66_s13 }
  0x11   :  { %v34_v7 = vrot.slane %v33_v5, 4  ;;  %s100_s14 = scalar_lea.vmem %s67_s13, 32  ;;  %p105_p6 = scmp.lt.s32.totalorder %s67_s13, %s67_s13 }
  0x12   :  { %v41_v8 = vrot.slane %v40_v6, 4  ;;  %p101_p5 = scmp.ne.s32.totalorder %s67_s13, %s100_s14  ;;  %p106_p7 = scmp.lt.s32.totalorder %s100_s14, %s100_s14 }
  0x13   :  { %v35_v9 = vadd.f32 %v34_v7, %v33_v5 }
  0x14   :  { %v42_v10 = vadd.f32 %v41_v8, %v40_v6  ;;  %p107_p8 = por %p106_p7, %p105_p6 }
  0x15   :  { %v36_v11 = vrot.slane %v35_v9, 2 }
  0x16   :  { %v43_v12 = vrot.slane %v42_v10, 2  ;;  %v28_v18 = vld [vmem:[#allocation2] sm:$0x3]  ;;  %p108_p9 = pnand %p107_p8, %p101_p5 }
  0x17   :  { %v37_v13 = vadd.f32 %v36_v11, %v35_v9 }
  0x18   :  { %v44_v14 = vadd.f32 %v43_v12, %v42_v10 }
  0x19   :  { %v38_v15 = vrot.slane %v37_v13, 1 }
  0x1a   :  { %v45_v16 = vrot.slane %v44_v14, 1 }
  0x1b   :  { %v39_v17 = vadd.f32 %v38_v15, %v37_v13 }
  0x1c   :  { %v46_v19 = vadd.f32 %v45_v16, %v44_v14 }
  0x1e   :  { %v50_v20 = vsel %vm49_vm0, %v46_v19, %v39_v17 }
  0x1f   :  { %v52_v21 = vadd.f32 %v50_v20, %v28_v18 }
  0x21   :  { %53 = vst [vmem:[#allocation2] sm:$0x3] %v52_v21 }
  0x28   :  { %v57_v22 = vld [vmem:[#allocation2] sm:$0x3] }
  0x29   :  { %v58_v23 = vmul.f32 0.015625, %v57_v22 }
  0x2b   :  { %59 = vst [vmem:[#allocation6] sm:$0x3] %v58_v23 }
  0x2c   :  { %111 = shalt.err (!%p108_p9)
}
  0x2d   :  { %69 = dma.vmem_to_hbm [thread:$0]  %s67_s13, 32, %s146_s1, [#allocation5]  }
  0x2e   :  { %122 = dma.done.wait [#allocation5], 32  }
  0x2f   :  { %123 = vsyncadd [#allocation5], 4294967264 }
  0x30   :  { %73 = vsyncpa [#allocation4], 1 }
  0x31   :  { %74 = vsyncpa [#allocation5], 1 }

</bundles_post_ra>
